<compile_context>
chip_gen: v5e
topology: v5e:2x2
jax: 0.10.0
libtpu: 0.0.40
codegen_flags: <defaults>
</compile_context>

<pallas_src>
from functools import partial

import numpy as np

import jax
import jax.numpy as jnp
from jax.experimental import pallas as pl
from jax.experimental.pallas import tpu as pltpu


# ----------------------------------------------------------------------------
# The single fused Pallas kernel: whole forward pass, activations in registers
# ----------------------------------------------------------------------------
def _fused_forward_kernel(*refs, layer_kinds):
    """refs = (x_ref, w0_ref, b0_ref, w1_ref, b1_ref, ..., o_ref).

    conv layer : w_ref is (pool, Din, Dout) block-Toeplitz stack, b_ref (1, Dout)
    linear     : w_ref is (Din, Dout),                            b_ref (1, Dout)
    """
    x_ref = refs[0]
    o_ref = refs[-1]
    param_refs = refs[1:-1]

    h = x_ref[...].astype(jnp.float32)          # (M, W) — M = 2*B rows
    idx = 0
    for kind in layer_kinds:
        w_ref = param_refs[idx]
        b_ref = param_refs[idx + 1]
        idx += 2
        if kind == "conv":
            # Conv1d + ReLU + MaxPool1d(pool) as `pool` matmuls + max + ReLU.
            pool = w_ref.shape[0]               # static
            acc = jnp.dot(h, w_ref[0], preferred_element_type=jnp.float32)
            for p in range(1, pool):            # pool is small & static -> unrolled
                acc = jnp.maximum(
                    acc, jnp.dot(h, w_ref[p], preferred_element_type=jnp.float32))
            h = jnp.maximum(acc + b_ref[...], 0.0)
        else:                                   # Flatten + Linear + ReLU
            h = jnp.maximum(
                jnp.dot(h, w_ref[...], preferred_element_type=jnp.float32)
                + b_ref[...], 0.0)
    o_ref[...] = h.astype(o_ref.dtype)


def fused_forward(x, fused_params):
    """x: (M, W) f32 (M = both Siamese branches stacked) -> (M, n_out) f32."""
    layer_kinds = tuple(kind for kind, _, _ in fused_params)

    flat_args = [x]
    in_specs = [pl.BlockSpec(x.shape, lambda i: (0, 0))]
    for _, w, b in fused_params:
        flat_args += [w, b]
        in_specs.append(pl.BlockSpec(w.shape, lambda i, n=w.ndim: (0,) * n))
        in_specs.append(pl.BlockSpec(b.shape, lambda i, n=b.ndim: (0,) * n))

    M = x.shape[0]
    n_out = fused_params[-1][1].shape[-1]
    return pl.pallas_call(
        partial(_fused_forward_kernel, layer_kinds=layer_kinds),
        out_shape=jax.ShapeDtypeStruct((M, n_out), jnp.float32),
        grid=(1,),
        in_specs=in_specs,
        out_specs=pl.BlockSpec((M, n_out), lambda i: (0, 0)),
        compiler_params=pltpu.CompilerParams(dimension_semantics=("arbitrary",)),
    )(*flat_args)


# ----------------------------------------------------------------------------
# One-time host-side parameter lowering (torch layout -> fused matmul form)
# ----------------------------------------------------------------------------
def prepare_fused_params(params, channels_in, window_size):
    """Convert torch-layout weights into the fused NLC-flattened matmul form.

    conv (Cout, Cin, K) + pool P -> stack of P block-Toeplitz matrices
        Wp[p, li*Cin+ci, lp*Cout+co] = w[co, ci, li - (lp*P + p)]  (within tap)
    linear (Nout, Cin*Lin)        -> column-permuted (Lin*Cin, Nout) matrix
    Done once on the host; the kernel then only sees dense matmuls.
    """
    fused = []
    Cin, Lin = channels_in, window_size
    for kind, w, b, pool in params:
        w = np.asarray(w, dtype=np.float32)
        b = np.asarray(b, dtype=np.float32)
        if kind == "conv":
            Cout, Cin_w, K = w.shape
            assert Cin_w == Cin
            Lout = Lin - K + 1
            Lp = Lout // pool                   # MaxPool1d floors (drops remainder)
            Wp = np.zeros((pool, Lin * Cin, Lp * Cout), np.float32)
            for p in range(pool):
                for lp in range(Lp):
                    lo = lp * pool + p          # conv output position for this tap
                    for k in range(K):
                        li = lo + k
                        Wp[p, li * Cin:(li + 1) * Cin,
                           lp * Cout:(lp + 1) * Cout] = w[:, :, k].T
            bt = np.tile(b, Lp).reshape(1, Lp * Cout)
            fused.append(("conv", jnp.asarray(Wp), jnp.asarray(bt)))
            Cin, Lin = Cout, Lp
        else:  # linear
            Nout, Din = w.shape
            assert Din == Cin * Lin
            # torch flattens NCL (index ci*Lin + li); our lanes are NLC (li*Cin + ci).
            Wl = w.reshape(Nout, Cin, Lin).transpose(2, 1, 0).reshape(Lin * Cin, Nout)
            fused.append(("linear", jnp.asarray(Wl), jnp.asarray(b.reshape(1, Nout))))
            Cin, Lin = Nout, 1
    return fused


# ----------------------------------------------------------------------------
# SiameseNetwork equivalent
# ----------------------------------------------------------------------------
def init_params(key, channels_in, window_size, cfg):
    """Torch-layout parameters (nn.Conv1d / nn.Linear weight shapes)."""
    params = []
    shape = (channels_in, window_size)
    for name, lc in cfg["layers"].items():
        if "conv" in name:
            Cout, K, P = lc["out_channels"], lc["kernel_size"], lc["pool"]
            Cin, L = shape
            key, k1, k2 = jax.random.split(key, 3)
            w = jax.random.normal(k1, (Cout, Cin, K), jnp.float32) * 0.1
            bb = jax.random.normal(k2, (Cout,), jnp.float32) * 0.01
            params.append(("conv", w, bb, P))
            shape = (Cout, (L - K + 1) // P)
        elif "linear" in name:
            out = lc["out_features"]
            in_dim = int(np.prod(shape))
            key, k1, k2 = jax.random.split(key, 3)
            w = jax.random.normal(k1, (out, in_dim), jnp.float32) * 0.05
            bb = jax.random.normal(k2, (out,), jnp.float32) * 0.01
            params.append(("linear", w, bb, None))
            shape = (out,)
    return params


def forward_once(x, fused_params):
    # torch: x.unsqueeze(1) -> (B, 1, W); with Cin=1 the NLC-flattened input is x.
    return fused_forward(x, fused_params)


def forward(input1, input2, fused_params):
    """Both Siamese branches share weights -> run them as one batched pass."""
    B = input1.shape[0]
    xcat = jnp.concatenate([input1, input2], axis=0)      # (2B, W)
    out = fused_forward(xcat, fused_params)                # single kernel launch
    return out[:B], out[B:]


# ----------------------------------------------------------------------------
# Pure-JAX reference (straightforward conv/pool/linear) for a semantics check
# ----------------------------------------------------------------------------
def _reference_forward_once(x, params):
    out = x[:, None, :]                                    # (B, 1, W)
    for kind, w, b, pool in params:
        if kind == "conv":
            Cout, Cin, K = w.shape
            Bn, _, L = out.shape
            Lout = L - K + 1
            cols = jnp.stack([out[:, :, k:k + Lout] for k in range(K)], axis=-1)
            y = jnp.einsum("bclk,ock->bol", cols, w) + b[None, :, None]
            y = jnp.maximum(y, 0.0)
            Lp = Lout // pool
            y = y[:, :, :Lp * pool].reshape(Bn, Cout, Lp, pool)
            out = jnp.max(y, axis=-1)
        else:
            Bn = out.shape[0]
            flat = out.reshape(Bn, -1)
            out = jnp.maximum(flat @ w.T + b, 0.0)
    return out


# ----------------------------------------------------------------------------
if __name__ == "__main__":
    B, W = 2, 32
    cfg = {
        "layers": {
            "conv1": {"out_channels": 8, "kernel_size": 5, "pool": 2},
            "conv2": {"out_channels": 16, "kernel_size": 3, "pool": 2},
            "linear1": {"out_features": 32},
        }
    }

    key = jax.random.PRNGKey(0)
    kx1, kx2, kp = jax.random.split(key, 3)
    x1 = jax.random.normal(kx1, (B, W), jnp.float32)
    x2 = jax.random.normal(kx2, (B, W), jnp.float32)

    params = init_params(kp, channels_in=1, window_size=W, cfg=cfg)
    fused = prepare_fused_params(params, channels_in=1, window_size=W)

    fwd = jax.jit(lambda a, b: forward(a, b, fused))
    o1, o2 = fwd(x1, x2)
    jax.block_until_ready((o1, o2))
    assert o1.shape == (B, 32) and o2.shape == (B, 32)

    # Semantics check against a plain-JAX implementation of the torch module.
    r1 = _reference_forward_once(x1, params)
    r2 = _reference_forward_once(x2, params)
    np.testing.assert_allclose(np.asarray(o1), np.asarray(r1), rtol=1e-3, atol=1e-4)
    np.testing.assert_allclose(np.asarray(o2), np.asarray(r2), rtol=1e-3, atol=1e-4)

    print("KERNEL_OK")
</pallas_src>

<mosaic_0001>
module attributes {stable_mosaic.version = 11 : i64} {
  func.func @_fused_forward_kernel(%arg0: i32, %arg1: memref<4x32xf32, #tpu.memory_space<vmem>>, %arg2: memref<2x32x112xf32, #tpu.memory_space<vmem>>, %arg3: memref<1x112xf32, #tpu.memory_space<vmem>>, %arg4: memref<2x112x96xf32, #tpu.memory_space<vmem>>, %arg5: memref<1x96xf32, #tpu.memory_space<vmem>>, %arg6: memref<96x32xf32, #tpu.memory_space<vmem>>, %arg7: memref<1x32xf32, #tpu.memory_space<vmem>>, %arg8: memref<4x32xf32, #tpu.memory_space<vmem>>) attributes {dimension_semantics = [#tpu.dimension_semantics<arbitrary>], iteration_bounds = array<i64: 1>, scalar_prefetch = 0 : i64, scratch_operands = 0 : i64, tpu.core_type = #tpu.core_type<tc>, window_params = [{pipeline_mode = #tpu.pipeline_mode<synchronous>, transform_indices = @transform_0, window_bounds = array<i64: 4, 32>}, {pipeline_mode = #tpu.pipeline_mode<synchronous>, transform_indices = @transform_1, window_bounds = array<i64: 2, 32, 112>}, {pipeline_mode = #tpu.pipeline_mode<synchronous>, transform_indices = @transform_2, window_bounds = array<i64: 1, 112>}, {pipeline_mode = #tpu.pipeline_mode<synchronous>, transform_indices = @transform_3, window_bounds = array<i64: 2, 112, 96>}, {pipeline_mode = #tpu.pipeline_mode<synchronous>, transform_indices = @transform_4, window_bounds = array<i64: 1, 96>}, {pipeline_mode = #tpu.pipeline_mode<synchronous>, transform_indices = @transform_5, window_bounds = array<i64: 96, 32>}, {pipeline_mode = #tpu.pipeline_mode<synchronous>, transform_indices = @transform_6, window_bounds = array<i64: 1, 32>}, {pipeline_mode = #tpu.pipeline_mode<synchronous>, transform_indices = @transform_7, window_bounds = array<i64: 4, 32>}]} {
    %c0 = arith.constant 0 : index
    %c0_0 = arith.constant 0 : index
    %0 = vector.load %arg1[%c0, %c0_0] : memref<4x32xf32, #tpu.memory_space<vmem>>, vector<4x32xf32>
    %c0_1 = arith.constant 0 : index
    %c0_2 = arith.constant 0 : index
    %c0_3 = arith.constant 0 : index
    %1 = vector.load %arg2[%c0_1, %c0_2, %c0_3] : memref<2x32x112xf32, #tpu.memory_space<vmem>>, vector<1x32x112xf32>
    %2 = vector.shape_cast %1 : vector<1x32x112xf32> to vector<32x112xf32>
    %cst = arith.constant dense<0.000000e+00> : vector<4x112xf32>
    %3 = tpu.matmul %0, %2, %cst {dimension_numbers = #tpu.dot_dimension_numbers<[1], [0], [0], [1], [0, 0, 1, 1], [], []>} : vector<4x32xf32>, vector<32x112xf32>, vector<4x112xf32> -> vector<4x112xf32>
    %c1 = arith.constant 1 : index
    %c0_4 = arith.constant 0 : index
    %c0_5 = arith.constant 0 : index
    %4 = vector.load %arg2[%c1, %c0_4, %c0_5] : memref<2x32x112xf32, #tpu.memory_space<vmem>>, vector<1x32x112xf32>
    %5 = vector.shape_cast %4 : vector<1x32x112xf32> to vector<32x112xf32>
    %cst_6 = arith.constant dense<0.000000e+00> : vector<4x112xf32>
    %6 = tpu.matmul %0, %5, %cst_6 {dimension_numbers = #tpu.dot_dimension_numbers<[1], [0], [0], [1], [0, 0, 1, 1], [], []>} : vector<4x32xf32>, vector<32x112xf32>, vector<4x112xf32> -> vector<4x112xf32>
    %7 = arith.maximumf %3, %6 : vector<4x112xf32>
    %c0_7 = arith.constant 0 : index
    %c0_8 = arith.constant 0 : index
    %8 = vector.load %arg3[%c0_7, %c0_8] : memref<1x112xf32, #tpu.memory_space<vmem>>, vector<1x112xf32>
    %9 = vector.broadcast %8 : vector<1x112xf32> to vector<4x112xf32>
    %10 = arith.addf %7, %9 : vector<4x112xf32>
    %cst_9 = arith.constant 0.000000e+00 : f32
    %11 = vector.broadcast %cst_9 : f32 to vector<4x112xf32>
    %12 = arith.maximumf %10, %11 : vector<4x112xf32>
    %c0_10 = arith.constant 0 : index
    %c0_11 = arith.constant 0 : index
    %c0_12 = arith.constant 0 : index
    %13 = vector.load %arg4[%c0_10, %c0_11, %c0_12] : memref<2x112x96xf32, #tpu.memory_space<vmem>>, vector<1x112x96xf32>
    %14 = vector.shape_cast %13 : vector<1x112x96xf32> to vector<112x96xf32>
    %cst_13 = arith.constant dense<0.000000e+00> : vector<4x96xf32>
    %15 = tpu.matmul %12, %14, %cst_13 {dimension_numbers = #tpu.dot_dimension_numbers<[1], [0], [0], [1], [0, 0, 1, 1], [], []>} : vector<4x112xf32>, vector<112x96xf32>, vector<4x96xf32> -> vector<4x96xf32>
    %c1_14 = arith.constant 1 : index
    %c0_15 = arith.constant 0 : index
    %c0_16 = arith.constant 0 : index
    %16 = vector.load %arg4[%c1_14, %c0_15, %c0_16] : memref<2x112x96xf32, #tpu.memory_space<vmem>>, vector<1x112x96xf32>
    %17 = vector.shape_cast %16 : vector<1x112x96xf32> to vector<112x96xf32>
    %cst_17 = arith.constant dense<0.000000e+00> : vector<4x96xf32>
    %18 = tpu.matmul %12, %17, %cst_17 {dimension_numbers = #tpu.dot_dimension_numbers<[1], [0], [0], [1], [0, 0, 1, 1], [], []>} : vector<4x112xf32>, vector<112x96xf32>, vector<4x96xf32> -> vector<4x96xf32>
    %19 = arith.maximumf %15, %18 : vector<4x96xf32>
    %c0_18 = arith.constant 0 : index
    %c0_19 = arith.constant 0 : index
    %20 = vector.load %arg5[%c0_18, %c0_19] : memref<1x96xf32, #tpu.memory_space<vmem>>, vector<1x96xf32>
    %21 = vector.broadcast %20 : vector<1x96xf32> to vector<4x96xf32>
    %22 = arith.addf %19, %21 : vector<4x96xf32>
    %cst_20 = arith.constant 0.000000e+00 : f32
    %23 = vector.broadcast %cst_20 : f32 to vector<4x96xf32>
    %24 = arith.maximumf %22, %23 : vector<4x96xf32>
    %c0_21 = arith.constant 0 : index
    %c0_22 = arith.constant 0 : index
    %25 = vector.load %arg6[%c0_21, %c0_22] : memref<96x32xf32, #tpu.memory_space<vmem>>, vector<96x32xf32>
    %cst_23 = arith.constant dense<0.000000e+00> : vector<4x32xf32>
    %26 = tpu.matmul %24, %25, %cst_23 {dimension_numbers = #tpu.dot_dimension_numbers<[1], [0], [0], [1], [0, 0, 1, 1], [], []>} : vector<4x96xf32>, vector<96x32xf32>, vector<4x32xf32> -> vector<4x32xf32>
    %c0_24 = arith.constant 0 : index
    %c0_25 = arith.constant 0 : index
    %27 = vector.load %arg7[%c0_24, %c0_25] : memref<1x32xf32, #tpu.memory_space<vmem>>, vector<1x32xf32>
    %28 = vector.broadcast %27 : vector<1x32xf32> to vector<4x32xf32>
    %29 = arith.addf %26, %28 : vector<4x32xf32>
    %cst_26 = arith.constant 0.000000e+00 : f32
    %30 = vector.broadcast %cst_26 : f32 to vector<4x32xf32>
    %31 = arith.maximumf %29, %30 : vector<4x32xf32>
    %c0_27 = arith.constant 0 : index
    %c0_28 = arith.constant 0 : index
    %32 = vector.load %arg8[%c0_27, %c0_28] : memref<4x32xf32, #tpu.memory_space<vmem>>, vector<4x32xf32>
    tpu.vector_store %arg8[%c0_27, %c0_28], %31 {strides = array<i32>} : memref<4x32xf32, #tpu.memory_space<vmem>>, vector<4x32xf32>,
    return
  }
  func.func @transform_0(%arg0: i32) -> (i32, i32) {
    %c0_i32 = arith.constant 0 : i32
    %c0_i32_0 = arith.constant 0 : i32
    %c0_i32_1 = arith.constant 0 : i32
    return %c0_i32, %c0_i32_0 : i32, i32
  }
  func.func @transform_1(%arg0: i32) -> (i32, i32, i32) {
    %c0_i32 = arith.constant 0 : i32
    %c0_i32_0 = arith.constant 0 : i32
    %c0_i32_1 = arith.constant 0 : i32
    %c0_i32_2 = arith.constant 0 : i32
    return %c0_i32, %c0_i32_0, %c0_i32_1 : i32, i32, i32
  }
  func.func @transform_2(%arg0: i32) -> (i32, i32) {
    %c0_i32 = arith.constant 0 : i32
    %c0_i32_0 = arith.constant 0 : i32
    %c0_i32_1 = arith.constant 0 : i32
    return %c0_i32, %c0_i32_0 : i32, i32
  }
  func.func @transform_3(%arg0: i32) -> (i32, i32, i32) {
    %c0_i32 = arith.constant 0 : i32
    %c0_i32_0 = arith.constant 0 : i32
    %c0_i32_1 = arith.constant 0 : i32
    %c0_i32_2 = arith.constant 0 : i32
    return %c0_i32, %c0_i32_0, %c0_i32_1 : i32, i32, i32
  }
  func.func @transform_4(%arg0: i32) -> (i32, i32) {
    %c0_i32 = arith.constant 0 : i32
    %c0_i32_0 = arith.constant 0 : i32
    %c0_i32_1 = arith.constant 0 : i32
    return %c0_i32, %c0_i32_0 : i32, i32
  }
  func.func @transform_5(%arg0: i32) -> (i32, i32) {
    %c0_i32 = arith.constant 0 : i32
    %c0_i32_0 = arith.constant 0 : i32
    %c0_i32_1 = arith.constant 0 : i32
    return %c0_i32, %c0_i32_0 : i32, i32
  }
  func.func @transform_6(%arg0: i32) -> (i32, i32) {
    %c0_i32 = arith.constant 0 : i32
    %c0_i32_0 = arith.constant 0 : i32
    %c0_i32_1 = arith.constant 0 : i32
    return %c0_i32, %c0_i32_0 : i32, i32
  }
  func.func @transform_7(%arg0: i32) -> (i32, i32) {
    %c0_i32 = arith.constant 0 : i32
    %c0_i32_0 = arith.constant 0 : i32
    %c0_i32_1 = arith.constant 0 : i32
    return %c0_i32, %c0_i32_0 : i32, i32
  }
}

</mosaic_0001>

<bundles_post_ra>
// kernel: _lambda_.1
= control target key start
LH: loop header
LB: loop body
LE: loop exit
PB: predicated region body
PF: predicated region fallthrough
CT: control target
= control target key end

     0   :  { %12 = vsyncpa [#allocation3], 0  ;;  %s423_s0 = inlined_call_operand.vmem [shape: f32[4,32], index: 0, kind: input, shape index: {}]   ;;  %s424_s1 = inlined_call_operand.hbm [shape: f32[2,32,112], index: 1, kind: input, shape index: {}]   ;;  %s425_s2 = inlined_call_operand.vmem [shape: f32[1,112], index: 2, kind: input, shape index: {}]   ;;  %s426_s3 = inlined_call_operand.hbm [shape: f32[2,112,96], index: 3, kind: input, shape index: {}]   ;;  %s427_s4 = inlined_call_operand.vmem [shape: f32[1,96], index: 4, kind: input, shape index: {}]   ;;  %s428_s5 = inlined_call_operand.hbm [shape: f32[96,32], index: 5, kind: input, shape index: {}]   ;;  %s429_s6 = inlined_call_operand.vmem [shape: f32[1,32], index: 6, kind: input, shape index: {}]   ;;  %s430_s7 = inlined_call_operand.vmem [shape: f32[4,32], index: 7, kind: output, shape index: {}]  }
   0x1   :  { %13 = vsyncpa [#allocation5], 0  ;;  %s35_s26 = sshll.u32 %s426_s3, 4  ;;  %s352_s27 = smov [#allocation4]   ;;  %s36_s26 = int_to_ptr.hbm [resolvable:$true] %s35_s26 }
   0x2   :  { %s37_s28 = sshll.u32 %s352_s27, 4  ;;  %s20_s8 = sshll.u32 %s424_s1, 4  ;;  %s38_s28 = int_to_ptr.vmem [resolvable:$true] %s37_s28  ;;  %s21_s8 = int_to_ptr.hbm [resolvable:$true] %s20_s8 }
   0x3   :  { %s353_s9 = smov 128   ;;  %s354_s10 = smov 8  }
   0x4   :  { %43 = dma.hbm_to_vmem [thread:$0]  %s36_s26, 3584, %s38_s28, [#allocation5], %s353_s9, %s353_s9, %s354_s10  }
   0x5   :  { %s355_s11 = smov [#allocation2]   ;;  %s50_s15 = sshll.u32 %s428_s5, 4  ;;  %s51_s15 = int_to_ptr.hbm [resolvable:$true] %s50_s15 }
   0x6   :  { %s22_s12 = sshll.u32 %s355_s11, 4  ;;  %s356_s3 = smov [#allocation6]   ;;  %s23_s12 = int_to_ptr.vmem [resolvable:$true] %s22_s12 }
   0x7   :  { %28 = dma.hbm_to_vmem [thread:$0]  %s21_s8, 1024, %s23_s12, [#allocation3], %s353_s9, %s353_s9, %s354_s10  }
   0x8   :  { %s52_s16 = sshll.u32 %s356_s3, 4  ;;  %s53_s16 = int_to_ptr.vmem [resolvable:$true] %s52_s16 }
   0x9   :  { %58 = dma.hbm_to_vmem [thread:$0]  %s51_s15, 1536, %s53_s16, [#allocation5], %s353_s9, %s353_s9, %s354_s10  }
   0xa   :  { %348 = dma.done.wait [#allocation3], 1024  }
   0xb   :  { %349 = vsyncadd [#allocation3], 4294966272 }
   0xc   :  { %350 = dma.done.wait [#allocation5], 5120  }
   0xd   :  { %351 = vsyncadd [#allocation5], 4294962176  ;;  %v77_v0 = vld [vmem:[#allocation2 + $0x18] sm:$0xff]  ;;  %v76_v1 = vld [vmem:[#allocation2 + $0x10] sm:$0xff]  ;;  %vm78_vm0 = vcmask 261120   ;;  %vm148_vm1 = vcmask 916480  }
   0xe   :  { %94 = vmatpush.msra.mxu1 %v77_v0  ;;  %v75_v2 = vld [vmem:[#allocation2 + $0x8] sm:$0xff]  ;;  %v186_v4 = vld [vmem:[#allocation4 + $0xd8] sm:$0xff]  ;;  %v146_v5 = vld [vmem:[#allocation4 + $0x60] sm:$0xff]  ;;  %vm230_vm2 = vcmask 785408   ;;  %vm255_vm3 = vcmask 257024  }
   0xf   :  { %v147_v3 = vld [vmem:[#allocation4 + $0x68] sm:$0xff]  ;;  %v74_v6 = vld [vmem:[#allocation2] sm:$0xff]  ;;  %189 = vmatpush.msra.mxu3 %v186_v4  ;;  %v185_v7 = vld [vmem:[#allocation4 + $0xd0] sm:$0xff] }
  0x10   :  { %95 = vmatpush.msra.mxu1 %v76_v1  ;;  %154 = vmatpush.msra.mxu2 %v147_v3  ;;  %v73_v8 = vld [vmem:[%s423_s0] sm:$0xf]  ;;  %v145_v9 = vld [vmem:[#allocation4 + $0x58] sm:$0xff]  ;;  %v184_v11 = vld [vmem:[#allocation4 + $0xc8] sm:$0xff] }
  0x11   :  { %v106_v10 = vld [vmem:[#allocation2 + $0x38] sm:$0xff]  ;;  %190 = vmatpush.msra.mxu3 %v185_v7  ;;  %v144_v12 = vld [vmem:[#allocation4 + $0x50] sm:$0xff]  ;;  %v183_v14 = vld [vmem:[#allocation4 + $0xc0] sm:$0xff] }
  0x12   :  { %96 = vmatpush.msra.mxu1 %v75_v2  ;;  %155 = vmatpush.msra.mxu2 %v146_v5  ;;  %v105_v13 = vld [vmem:[#allocation2 + $0x30] sm:$0xff]  ;;  %v143_v15 = vld [vmem:[#allocation4 + $0x48] sm:$0xff]  ;;  %v182_v17 = vld [vmem:[#allocation4 + $0xb8] sm:$0xff] }
  0x13   :  { %191 = vmatpush.msra.mxu3 %v184_v11  ;;  %v104_v16 = vld [vmem:[#allocation2 + $0x28] sm:$0xff]  ;;  %v142_v18 = vld [vmem:[#allocation4 + $0x40] sm:$0xff]  ;;  %v181_v20 = vld [vmem:[#allocation4 + $0xb0] sm:$0xff] }
  0x14   :  { %97 = vmatpush.msra.mxu1 %v74_v6  ;;  %156 = vmatpush.msra.mxu2 %v145_v9  ;;  %v103_v19 = vld [vmem:[#allocation2 + $0x20] sm:$0xff]  ;;  %v141_v21 = vld [vmem:[#allocation4 + $0x38] sm:$0xff]  ;;  %v180_v22 = vld [vmem:[#allocation4 + $0xa8] sm:$0xff] }
  0x15   :  { %263 = vmatmul.msk.f32.vlgmr.msra.gmra.mxu1 %vm78_vm0, %v73_v8  ;;  %192 = vmatpush.msra.mxu3 %v183_v14  ;;  %v140_v23 = vld [vmem:[#allocation4 + $0x30] sm:$0xff]  ;;  %v179_v24 = vld [vmem:[#allocation4 + $0xa0] sm:$0xff]  ;;  %v139_v25 = vld [vmem:[#allocation4 + $0x28] sm:$0xff] }
  0x16   :  { %119 = vmatpush.msrb.mxu1 %v106_v10  ;;  %157 = vmatpush.msra.mxu2 %v144_v12  ;;  %v178_v26 = vld [vmem:[#allocation4 + $0x98] sm:$0xff]  ;;  %v138_v27 = vld [vmem:[#allocation4 + $0x20] sm:$0xff]  ;;  %v177_v28 = vld [vmem:[#allocation4 + $0x90] sm:$0xff] }
  0x17   :  { %193 = vmatpush.msra.mxu3 %v182_v17  ;;  %v137_v29 = vld [vmem:[#allocation4 + $0x18] sm:$0xff]  ;;  %v176_v30 = vld [vmem:[#allocation4 + $0x88] sm:$0xff]  ;;  %v136_v31 = vld [vmem:[#allocation4 + $0x10] sm:$0xff] }
  0x18   :  { %120 = vmatpush.msrb.mxu1 %v105_v13  ;;  %158 = vmatpush.msra.mxu2 %v143_v15  ;;  %v175_v32 = vld [vmem:[#allocation4 + $0x80] sm:$0xff]  ;;  %v135_v33 = vld [vmem:[#allocation4 + $0x8] sm:$0xff]  ;;  %v174_v34 = vld [vmem:[#allocation4 + $0x78] sm:$0xff] }
  0x19   :  { %194 = vmatpush.msra.mxu3 %v181_v20  ;;  %v134_v35 = vld [vmem:[#allocation4] sm:$0xff]  ;;  %v173_v36 = vld [vmem:[#allocation4 + $0x70] sm:$0xff]  ;;  %v225_v37 = vld [vmem:[#allocation6 + $0x58] sm:$0xff] }
  0x1a   :  { %121 = vmatpush.msrb.mxu1 %v104_v16  ;;  %159 = vmatpush.msra.mxu2 %v142_v18  ;;  %v224_v38 = vld [vmem:[#allocation6 + $0x50] sm:$0xff]  ;;  %v223_v39 = vld [vmem:[#allocation6 + $0x48] sm:$0xff]  ;;  %v222_v40 = vld [vmem:[#allocation6 + $0x40] sm:$0xff] }
  0x1b   :  { %195 = vmatpush.msra.mxu3 %v180_v22  ;;  %238 = vmatpush.msra.mxu0 %v225_v37  ;;  %v221_v41 = vld [vmem:[#allocation6 + $0x38] sm:$0xff]  ;;  %v220_v42 = vld [vmem:[#allocation6 + $0x30] sm:$0xff]  ;;  %v219_v43 = vld [vmem:[#allocation6 + $0x28] sm:$0xff] }
  0x1c   :  { %122 = vmatpush.msrb.mxu1 %v103_v19  ;;  %160 = vmatpush.msra.mxu2 %v141_v21  ;;  %v218_v44 = vld [vmem:[#allocation6 + $0x20] sm:$0xff]  ;;  %v217_v51 = vld [vmem:[#allocation6 + $0x18] sm:$0xff]  ;;  %v216_v52 = vld [vmem:[#allocation6 + $0x10] sm:$0xff] }
  0x1d   :  { %264 = vmatmul.msk.f32.vlgmr.msrb.gmra.mxu1 %vm78_vm0, %v73_v8  ;;  %196 = vmatpush.msra.mxu3 %v179_v24  ;;  %v273_v46 = vld [vmem:[%s425_s2] ss:$0 sm:$0xff]  ;;  %v215_v53 = vld [vmem:[#allocation6 + $0x8] sm:$0xff] }
  0x1e   :  { %161 = vmatpush.msra.mxu2 %v140_v23  ;;  %239 = vmatpush.msra.mxu0 %v224_v38  ;;  %v214_v54 = vld [vmem:[#allocation6] sm:$0xff] }
  0x1f   :  { %197 = vmatpush.msra.mxu3 %v178_v26  ;;  %v274_v55 = vld [vmem:[%s427_s4] ss:$0 sm:$0xff] }
  0x20   :  { %162 = vmatpush.msra.mxu2 %v139_v25  ;;  %240 = vmatpush.msra.mxu0 %v223_v39  ;;  %v275_v61 = vld [vmem:[%s429_s6] ss:$0 sm:$0xff] }
  0x21   :  { %198 = vmatpush.msra.mxu3 %v177_v28 }
  0x22   :  { %163 = vmatpush.msra.mxu2 %v138_v27  ;;  %241 = vmatpush.msra.mxu0 %v222_v40 }
  0x23   :  { %199 = vmatpush.msra.mxu3 %v176_v30 }
  0x24   :  { %164 = vmatpush.msra.mxu2 %v137_v29  ;;  %242 = vmatpush.msra.mxu0 %v221_v41 }
  0x25   :  { %200 = vmatpush.msra.mxu3 %v175_v32 }
  0x26   :  { %165 = vmatpush.msra.mxu2 %v136_v31  ;;  %243 = vmatpush.msra.mxu0 %v220_v42 }
  0x27   :  { %201 = vmatpush.msra.mxu3 %v174_v34 }
  0x28   :  { %166 = vmatpush.msra.mxu2 %v135_v33  ;;  %244 = vmatpush.msra.mxu0 %v219_v43 }
  0x29   :  { %202 = vmatpush.msra.mxu3 %v173_v36 }
  0x2a   :  { %167 = vmatpush.msra.mxu2 %v134_v35  ;;  %245 = vmatpush.msra.mxu0 %v218_v44 }
  0x2c   :  { %246 = vmatpush.msra.mxu0 %v217_v51 }
  0x2e   :  { %247 = vmatpush.msra.mxu0 %v216_v52 }
  0x30   :  { %248 = vmatpush.msra.mxu0 %v215_v53 }
  0x32   :  { %249 = vmatpush.msra.mxu0 %v214_v54 }
  0x92   :  { %v99_v45 = vpop.f32.mrf.mxu1 }
  0x9a   :  { %v124_v47 = vpop.f32.mrf.mxu1 }
  0x9b   :  { %v127_v48 = vmax.f32 %v99_v45, %v124_v47 }
  0x9d   :  { %v132_v49 = vadd.f32 %v273_v46, %v127_v48 }
  0x9f   :  { %v133_v50 = vmax.f32 %v132_v49, 0.0 }
  0xa1   :  { %265 = vmatmul.msk.f32.vlgmr.msra.gmra.mxu2 %vm148_vm1, %v133_v50  ;;  %266 = vmatmul.msk.f32.vlgmr.msra.gmra.mxu3 %vm148_vm1, %v133_v50 }
 0x124   :  { %v169_v56 = vpop.f32.mrf.mxu2  ;;  %v204_v57 = vpop.f32.mrf.mxu3 }
 0x125   :  { %v207_v58 = vmax.f32 %v169_v56, %v204_v57 }
 0x127   :  { %v212_v59 = vadd.f32 %v274_v55, %v207_v58 }
 0x129   :  { %v213_v60 = vmax.f32 %v212_v59, 0.0 }
 0x12b   :  { %267 = vmatmul.msk.f32.vlgmr.msra.gmra.mxu0 %vm230_vm2, %v213_v60 }
 0x1a8   :  { %v251_v62 = vpop.f32.mrf.mxu0 }
 0x1a9   :  { %v252_v63 = vadd.f32 %v275_v61, %v251_v62 }
 0x1ab   :  { %v254_v0 = vmax.f32 %v252_v63, 0.0 }
 0x1ad   :  { %256 = vst.msk [vmem:[%s430_s7] sm:$0xf] %vm255_vm3, %v254_v0 }
 0x1ae   :  { %261 = vsyncpa [#allocation3], 1 }
 0x1af   :  { %262 = vsyncpa [#allocation5], 1 }

</bundles_post_ra>
